<compile_context>
chip_gen: v7x
topology: tpu7x:2x2x1
jax: 0.10.0
libtpu: 0.0.40
codegen_flags: <defaults>
</compile_context>

<pallas_src>
import jax
import jax.numpy as jnp
from jax.experimental import pallas as pl
from jax.experimental.pallas import tpu as pltpu


# ----------------------------------------------------------------------------
# Tiling helper
# ----------------------------------------------------------------------------
def _pick_tile_n(n, cap=512):
    """Largest power-of-two multiple of 128 that divides n (<= cap), else n.

    A multiple of 128 keeps the coordinates [B, tile_n] block lane-aligned;
    falling back to the full axis keeps small/irregular N legal (block == full
    array dim).  At D=32 f32 a 512-row tile is ~64 KiB per batch row per
    buffer, so double-buffered t + coords + out stays well inside scoped VMEM
    on v5e/v6e/v7x.
    """
    t = cap
    while t >= 128:
        if n % t == 0:
            return t
        t //= 2
    return n


# ----------------------------------------------------------------------------
# Kernel 1: RotaryEmbedding.forward  (kept for API compatibility)
#   coords [B, N], inv_freq_scaled [1, dim//2] -> freqs [B, N, dim]
#   freqs = concat(coords * inv_freq_scaled, coords * inv_freq_scaled, -1)
# ----------------------------------------------------------------------------
def _rotary_freqs_kernel(coords_ref, invf_ref, out_ref):
    c = coords_ref[...].astype(jnp.float32)                 # [B, tn]
    invf = invf_ref[0, :].astype(jnp.float32)               # [half]
    f = c[:, :, None] * invf[None, None, :]                 # [B, tn, half]
    out_ref[...] = jnp.concatenate([f, f], axis=-1).astype(out_ref.dtype)


def rotary_embedding_forward(coordinates, inv_freq, *, min_freq=1.0 / 64,
                             scale=1.0, tile_n=None):
    """coordinates: [B, N]; inv_freq: [dim//2] -> freqs [B, N, dim]."""
    B, N = coordinates.shape
    half = inv_freq.shape[0]
    dim = 2 * half
    tn = _pick_tile_n(N) if tile_n is None else tile_n
    # Fold scale/min_freq into inv_freq on the host (removes a per-element mul).
    invf_scaled = (inv_freq.astype(jnp.float32) * (scale / min_freq)).reshape(1, half)
    return pl.pallas_call(
        _rotary_freqs_kernel,
        out_shape=jax.ShapeDtypeStruct((B, N, dim), coordinates.dtype),
        grid=(N // tn,),
        in_specs=[
            pl.BlockSpec((B, tn), lambda j: (0, j)),
            pl.BlockSpec((1, half), lambda j: (0, 0)),
        ],
        out_specs=pl.BlockSpec((B, tn, dim), lambda j: (0, j, 0)),
        compiler_params=pltpu.CompilerParams(dimension_semantics=("parallel",)),
    )(coordinates, invf_scaled)


# ----------------------------------------------------------------------------
# Kernel 2 (main performance path): fused forward + apply_rotary_pos_emb
#   out[..., :h] = t1*cos(a) - t2*sin(a)
#   out[..., h:] = t2*cos(a) + t1*sin(a)      with a = coords * inv_freq_scaled
# ----------------------------------------------------------------------------
def _fused_rope_kernel(coords_ref, invf_ref, t_ref, out_ref):
    c = coords_ref[...].astype(jnp.float32)                 # [B, tn]
    invf = invf_ref[0, :].astype(jnp.float32)               # [half]
    ang = c[:, :, None] * invf[None, None, :]               # [B, tn, half]
    cos = jnp.cos(ang)
    sin = jnp.sin(ang)
    t = t_ref[...]
    half = t.shape[-1] // 2
    t1 = t[..., :half].astype(jnp.float32)
    t2 = t[..., half:].astype(jnp.float32)
    out = jnp.concatenate([t1 * cos - t2 * sin, t2 * cos + t1 * sin], axis=-1)
    out_ref[...] = out.astype(out_ref.dtype)


def apply_rotary_pos_emb_fused(t, coordinates, inv_freq, *, min_freq=1.0 / 64,
                               scale=1.0, tile_n=None):
    """Fused RotaryEmbedding.forward + apply_1d_rotary_pos_emb.

    t: [B, N, D], coordinates: [B, N], inv_freq: [D//2] -> [B, N, D].
    Avoids materializing the [B, N, D] freqs tensor in HBM.
    """
    B, N, D = t.shape
    half = inv_freq.shape[0]
    assert D == 2 * half
    tn = _pick_tile_n(N) if tile_n is None else tile_n
    invf_scaled = (inv_freq.astype(jnp.float32) * (scale / min_freq)).reshape(1, half)
    return pl.pallas_call(
        _fused_rope_kernel,
        out_shape=jax.ShapeDtypeStruct((B, N, D), t.dtype),
        grid=(N // tn,),
        in_specs=[
            pl.BlockSpec((B, tn), lambda j: (0, j)),
            pl.BlockSpec((1, half), lambda j: (0, 0)),
            pl.BlockSpec((B, tn, D), lambda j: (0, j, 0)),
        ],
        out_specs=pl.BlockSpec((B, tn, D), lambda j: (0, j, 0)),
        compiler_params=pltpu.CompilerParams(dimension_semantics=("parallel",)),
    )(coordinates, invf_scaled, t)


# ----------------------------------------------------------------------------
# Kernel 3: apply_1d_rotary_pos_emb(t, freqs)  (API-compatible, unfused)
#   Assumes freqs is the duplicated concat produced by forward, so only the
#   first half of the angle is unique -> halves the cos/sin (EUP) work.
# ----------------------------------------------------------------------------
def _apply_rotary_kernel(t_ref, freqs_ref, out_ref):
    t = t_ref[...]
    freqs = freqs_ref[...]
    half = t.shape[-1] // 2
    f = freqs[..., :half].astype(jnp.float32)               # unique half of angle
    cos = jnp.cos(f)
    sin = jnp.sin(f)
    t1 = t[..., :half].astype(jnp.float32)
    t2 = t[..., half:].astype(jnp.float32)
    out = jnp.concatenate([t1 * cos - t2 * sin, t2 * cos + t1 * sin], axis=-1)
    out_ref[...] = out.astype(out_ref.dtype)


def apply_1d_rotary_pos_emb(t, freqs, *, tile_n=None):
    """t: [B, N, D], freqs: [B, N, D] (duplicated halves, as forward emits)."""
    B, N, D = t.shape
    assert freqs.shape == (B, N, D)
    tn = _pick_tile_n(N) if tile_n is None else tile_n
    return pl.pallas_call(
        _apply_rotary_kernel,
        out_shape=jax.ShapeDtypeStruct((B, N, D), t.dtype),
        grid=(N // tn,),
        in_specs=[
            pl.BlockSpec((B, tn, D), lambda j: (0, j, 0)),
            pl.BlockSpec((B, tn, D), lambda j: (0, j, 0)),
        ],
        out_specs=pl.BlockSpec((B, tn, D), lambda j: (0, j, 0)),
        compiler_params=pltpu.CompilerParams(dimension_semantics=("parallel",)),
    )(t, freqs)


# ----------------------------------------------------------------------------
# Pure-JAX references (correctness checks)
# ----------------------------------------------------------------------------
def _ref_forward(coordinates, inv_freq, min_freq, scale):
    c = coordinates * (scale / min_freq)
    freqs = jnp.einsum("bi,j->bij", c, inv_freq)
    return jnp.concatenate([freqs, freqs], axis=-1)


def _ref_apply(t, freqs):
    d = t.shape[-1]
    half = d // 2
    rot = jnp.concatenate([-t[..., half:], t[..., :half]], axis=-1)
    return t * jnp.cos(freqs) + rot * jnp.sin(freqs)


if __name__ == "__main__":
    # Module parameters (deterministic, as in __init__).
    dim = 32
    min_freq = 1.0 / 64
    scale = 1.0
    inv_freq = 1.0 / (10000.0 ** (jnp.arange(0, dim, 2, dtype=jnp.float32) / dim))

    # Example inputs.
    key = jax.random.PRNGKey(0)
    k1, k2 = jax.random.split(key)
    B, N = 2, 64
    coordinates = jax.random.uniform(k1, (B, N), dtype=jnp.float32)   # [B, num_points]
    t = jax.random.normal(k2, (B, N, dim), dtype=jnp.float32)         # feature tensor

    # Forward: freqs [B, N, dim]  (API-compatible path).
    freqs = jax.block_until_ready(
        rotary_embedding_forward(coordinates, inv_freq, min_freq=min_freq, scale=scale))
    freqs_ref = _ref_forward(coordinates, inv_freq, min_freq, scale)
    assert freqs.shape == (B, N, dim)
    assert jnp.allclose(freqs, freqs_ref, atol=1e-5, rtol=1e-5)

    # apply_1d_rotary_pos_emb (unfused, API-compatible).
    out_ref = _ref_apply(t, freqs_ref)
    out = jax.block_until_ready(apply_1d_rotary_pos_emb(t, freqs))
    assert out.shape == (B, N, dim)
    assert jnp.allclose(out, out_ref, atol=1e-5, rtol=1e-5)

    # Fused path (forward + apply in one kernel, no freqs in HBM).
    out_fused = jax.block_until_ready(
        apply_rotary_pos_emb_fused(t, coordinates, inv_freq,
                                   min_freq=min_freq, scale=scale))
    assert jnp.allclose(out_fused, out_ref, atol=1e-5, rtol=1e-5)

    print("KERNEL_OK")
</pallas_src>

<mosaic_0001>
module attributes {stable_mosaic.version = 11 : i64} {
  func.func @_rotary_freqs_kernel(%arg0: i32, %arg1: memref<2x64xf32, #tpu.memory_space<vmem>>, %arg2: memref<1x16xf32, #tpu.memory_space<vmem>>, %arg3: memref<2x64x32xf32, #tpu.memory_space<vmem>>) attributes {dimension_semantics = [#tpu.dimension_semantics<parallel>], iteration_bounds = array<i64: 1>, scalar_prefetch = 0 : i64, scratch_operands = 0 : i64, tpu.core_type = #tpu.core_type<tc>, window_params = [{transform_indices = @transform_0, window_bounds = array<i64: 2, 64>}, {pipeline_mode = #tpu.pipeline_mode<synchronous>, transform_indices = @transform_1, window_bounds = array<i64: 1, 16>}, {transform_indices = @transform_2, window_bounds = array<i64: 2, 64, 32>}]} {
    %c0 = arith.constant 0 : index
    %c0_0 = arith.constant 0 : index
    %0 = vector.load %arg1[%c0, %c0_0] : memref<2x64xf32, #tpu.memory_space<vmem>>, vector<2x64xf32>
    %c0_1 = arith.constant 0 : index
    %c0_2 = arith.constant 0 : index
    %1 = vector.load %arg2[%c0_1, %c0_2] : memref<1x16xf32, #tpu.memory_space<vmem>>, vector<1x16xf32>
    %2 = vector.shape_cast %1 : vector<1x16xf32> to vector<16xf32>
    %3 = vector.shape_cast %0 : vector<2x64xf32> to vector<2x64x1xf32>
    %4 = vector.shape_cast %2 : vector<16xf32> to vector<1x1x16xf32>
    %5 = vector.broadcast %3 : vector<2x64x1xf32> to vector<2x64x16xf32>
    %6 = vector.broadcast %4 : vector<1x1x16xf32> to vector<2x64x16xf32>
    %7 = arith.mulf %5, %6 : vector<2x64x16xf32>
    %8 = tpu.concatenate %7, %7 in 2 : vector<2x64x16xf32>, vector<2x64x16xf32> -> vector<2x64x32xf32>
    %c0_3 = arith.constant 0 : index
    %c0_4 = arith.constant 0 : index
    %c0_5 = arith.constant 0 : index
    %9 = vector.load %arg3[%c0_3, %c0_4, %c0_5] : memref<2x64x32xf32, #tpu.memory_space<vmem>>, vector<2x64x32xf32>
    tpu.vector_store %arg3[%c0_3, %c0_4, %c0_5], %8 {strides = array<i32>} : memref<2x64x32xf32, #tpu.memory_space<vmem>>, vector<2x64x32xf32>,
    return
  }
  func.func @transform_0(%arg0: i32) -> (i32, i32) {
    %c0_i32 = arith.constant 0 : i32
    %c0_i32_0 = arith.constant 0 : i32
    return %c0_i32, %arg0 : i32, i32
  }
  func.func @transform_1(%arg0: i32) -> (i32, i32) {
    %c0_i32 = arith.constant 0 : i32
    %c0_i32_0 = arith.constant 0 : i32
    %c0_i32_1 = arith.constant 0 : i32
    return %c0_i32, %c0_i32_0 : i32, i32
  }
  func.func @transform_2(%arg0: i32) -> (i32, i32, i32) {
    %c0_i32 = arith.constant 0 : i32
    %c0_i32_0 = arith.constant 0 : i32
    %c0_i32_1 = arith.constant 0 : i32
    return %c0_i32, %arg0, %c0_i32_0 : i32, i32, i32
  }
}

</mosaic_0001>

<bundles_post_ra>
// kernel: tpu_custom_call.1
= control target key start
LH: loop header
LB: loop body
LE: loop exit
PB: predicated region body
PF: predicated region fallthrough
CT: control target
= control target key end

     0   :  { %7 = vsyncpa [#allocation3], 0  ;;  %s247_s9 = smov [#allocation2]   ;;  %s375_s0 = inlined_call_operand.hbm [shape: f32[2,64], index: 0, kind: input, shape index: {}]   ;;  %s376_s1 = inlined_call_operand.vmem [shape: f32[1,16], index: 1, kind: input, shape index: {}]   ;;  %s377_s2 = inlined_call_operand.vmem [shape: f32[2,64,32], index: 2, kind: output, shape index: {}]  }
   0x1   :  { %s14_s10 = sshll.u32 %s247_s9, 4  ;;  %s223_s13 = scalar_lea.hbm %s375_s0, 32  ;;  %s15_s10 = int_to_ptr.vmem [resolvable:$true] %s14_s10 }
   0x2   :  { %p224_p0 = scmp.ne.s32.totalorder %s375_s0, %s223_s13  ;;  %p227_p1 = scmp.lt.u32.totalorder %s223_s13, %s375_s0 }
   0x4   :  { %p229_p2 = pnand %p227_p1, %p224_p0 }
   0x6   :  { %232 = shalt.err (!%p229_p2)
}
   0x7   :  { %s233_s18 = scalar_lea.vmem %s15_s10, 32  ;;  %p238_p4 = scmp.lt.s32.totalorder %s15_s10, %s15_s10 }
   0x8   :  { %p234_p3 = scmp.ne.s32.totalorder %s15_s10, %s233_s18  ;;  %p239_p5 = scmp.lt.s32.totalorder %s233_s18, %s233_s18 }
   0xa   :  { %p240_p6 = por %p239_p5, %p238_p4 }
   0xc   :  { %p241_p7 = pnand %p240_p6, %p234_p3 }
   0xe   :  { %244 = shalt.err (!%p241_p7)
}
   0xf   :  { %17 = dma.hbm_to_vmem [thread:$0]  %s375_s0, 32, %s15_s10, [#allocation3]  }
  0x10   :  { %245 = dma.done.wait [#allocation3], 32  }
  0x11   :  { %246 = vsyncadd [#allocation3], 4294967264  ;;  %v25_v0 = vlaneseq  ;;  %v23_v3 = vld [vmem:[#allocation2] sm:$0x3]  ;;  %s248_s22 = smov 16   ;;  %vm181_vm0 = vcmask 130048  }
  0x12   :  { %v220_v7 = vld [vmem:[%s376_s1] ss:$0 sm:$0xff]  ;;  %vm198_vm1 = vcmask 261120  }
  0x13   :  { %v26_v1 = vshrl.u32 %v25_v0, 7 }
  0x15   :  { %v27_v2 = vsub.s32 0, %v26_v1  ;;  %v62_v5 = vsub.s32 1, %v26_v1 }
  0x17   :  { %v28_v4 = vrot.slane %v23_v3, %v27_v2  ;;  %v63_v6 = vrot.slane %v23_v3, %v62_v5 }
  0x19   :  { %30 = vbcast.lane.b32.xlu0 %v28_v4, 256  ;;  %38 = vbcast.lane.b32.xlu1 %v28_v4, 272 }
  0x1d   :  { %34 = vbcast.lane.b32.xlu0 %v28_v4, 264  ;;  %42 = vbcast.lane.b32.xlu1 %v28_v4, 280 }
  0x21   :  { %46 = vbcast.lane.b32.xlu0 %v28_v4, 288  ;;  %50 = vbcast.lane.b32.xlu1 %v28_v4, 296 }
  0x25   :  { %54 = vbcast.lane.b32.xlu0 %v28_v4, 304  ;;  %58 = vbcast.lane.b32.xlu1 %v28_v4, 312 }
  0x29   :  { %65 = vbcast.lane.b32.xlu0 %v63_v6, 256  ;;  %69 = vbcast.lane.b32.xlu1 %v63_v6, 264 }
  0x2d   :  { %73 = vbcast.lane.b32.xlu0 %v63_v6, 272  ;;  %77 = vbcast.lane.b32.xlu1 %v63_v6, 280 }
  0x31   :  { %81 = vbcast.lane.b32.xlu0 %v63_v6, 288  ;;  %85 = vbcast.lane.b32.xlu1 %v63_v6, 296 }
  0x35   :  { %89 = vbcast.lane.b32.xlu0 %v63_v6, 304  ;;  %93 = vbcast.lane.b32.xlu1 %v63_v6, 312 }
  0x8b   :  { %v31_v8 = vpop.permute.xlu0 %30  ;;  %v39_v9 = vpop.permute.xlu1 %38 }
  0x8c   :  { %v101_v10 = vmul.f32 %v220_v7, %v31_v8  ;;  %v103_v11 = vmul.f32 %v220_v7, %v39_v9 }
  0x8e   :  { %133 = vrot.lane.b32.xlu0 %v101_v10, %s248_s22 }
  0x8f   :  { %v35_v12 = vpop.permute.xlu0 %34  ;;  %v43_v13 = vpop.permute.xlu1 %42 }
  0x90   :  { %v102_v14 = vmul.f32 %v220_v7, %v35_v12  ;;  %v104_v15 = vmul.f32 %v220_v7, %v43_v13 }
  0x92   :  { %137 = vrot.lane.b32.xlu0 %v103_v11, %s248_s22  ;;  %135 = vrot.lane.b32.xlu1 %v102_v14, %s248_s22 }
  0x93   :  { %v47_v16 = vpop.permute.xlu0 %46  ;;  %v51_v17 = vpop.permute.xlu1 %50 }
  0x94   :  { %v105_v18 = vmul.f32 %v220_v7, %v47_v16  ;;  %v106_v19 = vmul.f32 %v220_v7, %v51_v17 }
  0x96   :  { %139 = vrot.lane.b32.xlu1 %v104_v15, %s248_s22  ;;  %141 = vrot.lane.b32.xlu0 %v105_v18, %s248_s22 }
  0x97   :  { %v55_v20 = vpop.permute.xlu0 %54  ;;  %v59_v21 = vpop.permute.xlu1 %58 }
  0x98   :  { %v107_v22 = vmul.f32 %v220_v7, %v55_v20  ;;  %v108_v23 = vmul.f32 %v220_v7, %v59_v21 }
  0x9a   :  { %143 = vrot.lane.b32.xlu1 %v106_v19, %s248_s22  ;;  %145 = vrot.lane.b32.xlu0 %v107_v22, %s248_s22 }
  0x9b   :  { %v66_v24 = vpop.permute.xlu0 %65  ;;  %v70_v25 = vpop.permute.xlu1 %69 }
  0x9c   :  { %v109_v26 = vmul.f32 %v220_v7, %v66_v24  ;;  %v110_v27 = vmul.f32 %v220_v7, %v70_v25 }
  0x9e   :  { %147 = vrot.lane.b32.xlu1 %v108_v23, %s248_s22  ;;  %149 = vrot.lane.b32.xlu0 %v109_v26, %s248_s22 }
  0x9f   :  { %v74_v28 = vpop.permute.xlu0 %73  ;;  %v78_v29 = vpop.permute.xlu1 %77 }
  0xa0   :  { %v111_v30 = vmul.f32 %v220_v7, %v74_v28  ;;  %v112_v31 = vmul.f32 %v220_v7, %v78_v29 }
  0xa2   :  { %151 = vrot.lane.b32.xlu1 %v110_v27, %s248_s22  ;;  %153 = vrot.lane.b32.xlu0 %v111_v30, %s248_s22 }
  0xa3   :  { %v82_v32 = vpop.permute.xlu0 %81  ;;  %v86_v33 = vpop.permute.xlu1 %85 }
  0xa4   :  { %v113_v34 = vmul.f32 %v220_v7, %v82_v32  ;;  %v114_v35 = vmul.f32 %v220_v7, %v86_v33 }
  0xa6   :  { %155 = vrot.lane.b32.xlu1 %v112_v31, %s248_s22  ;;  %157 = vrot.lane.b32.xlu0 %v113_v34, %s248_s22 }
  0xa7   :  { %v90_v36 = vpop.permute.xlu0 %89  ;;  %v94_v37 = vpop.permute.xlu1 %93 }
  0xa8   :  { %v115_v38 = vmul.f32 %v220_v7, %v90_v36  ;;  %v116_v39 = vmul.f32 %v220_v7, %v94_v37 }
  0xaa   :  { %159 = vrot.lane.b32.xlu1 %v114_v35, %s248_s22  ;;  %161 = vrot.lane.b32.xlu0 %v115_v38, %s248_s22 }
  0xae   :  { %163 = vrot.lane.b32.xlu1 %v116_v39, %s248_s22 }
 0x100   :  { %v134_v40 = vpop.permute.xlu0 %133 }
 0x101   :  { %v182_v41 = vsel %vm181_vm0, %v101_v10, %v134_v40 }
 0x102   :  { %199 = vst.msk [vmem:[%s377_s2] sm:$0xff] %vm198_vm1, %v182_v41 }
 0x104   :  { %v136_v42 = vpop.permute.xlu1 %135  ;;  %v138_v43 = vpop.permute.xlu0 %137 }
 0x105   :  { %v183_v44 = vsel %vm181_vm0, %v102_v14, %v136_v42  ;;  %v184_v45 = vsel %vm181_vm0, %v103_v11, %v138_v43 }
 0x106   :  { %200 = vst.msk [vmem:[%s377_s2 + $0x8] sm:$0xff] %vm198_vm1, %v183_v44  ;;  %201 = vst.msk [vmem:[%s377_s2 + $0x10] sm:$0xff] %vm198_vm1, %v184_v45 }
 0x108   :  { %v140_v46 = vpop.permute.xlu1 %139  ;;  %v142_v47 = vpop.permute.xlu0 %141 }
 0x109   :  { %v185_v48 = vsel %vm181_vm0, %v104_v15, %v140_v46  ;;  %v186_v49 = vsel %vm181_vm0, %v105_v18, %v142_v47 }
 0x10a   :  { %202 = vst.msk [vmem:[%s377_s2 + $0x18] sm:$0xff] %vm198_vm1, %v185_v48  ;;  %203 = vst.msk [vmem:[%s377_s2 + $0x20] sm:$0xff] %vm198_vm1, %v186_v49 }
 0x10c   :  { %v144_v50 = vpop.permute.xlu1 %143  ;;  %v146_v51 = vpop.permute.xlu0 %145 }
 0x10d   :  { %v187_v52 = vsel %vm181_vm0, %v106_v19, %v144_v50  ;;  %v188_v53 = vsel %vm181_vm0, %v107_v22, %v146_v51 }
 0x10e   :  { %204 = vst.msk [vmem:[%s377_s2 + $0x28] sm:$0xff] %vm198_vm1, %v187_v52  ;;  %205 = vst.msk [vmem:[%s377_s2 + $0x30] sm:$0xff] %vm198_vm1, %v188_v53 }
 0x110   :  { %v148_v54 = vpop.permute.xlu1 %147  ;;  %v150_v55 = vpop.permute.xlu0 %149 }
 0x111   :  { %v189_v56 = vsel %vm181_vm0, %v108_v23, %v148_v54  ;;  %v190_v57 = vsel %vm181_vm0, %v109_v26, %v150_v55 }
 0x112   :  { %206 = vst.msk [vmem:[%s377_s2 + $0x38] sm:$0xff] %vm198_vm1, %v189_v56  ;;  %207 = vst.msk [vmem:[%s377_s2 + $0x40] sm:$0xff] %vm198_vm1, %v190_v57 }
 0x114   :  { %v152_v58 = vpop.permute.xlu1 %151  ;;  %v154_v59 = vpop.permute.xlu0 %153 }
 0x115   :  { %v191_v60 = vsel %vm181_vm0, %v110_v27, %v152_v58  ;;  %v192_v61 = vsel %vm181_vm0, %v111_v30, %v154_v59 }
 0x116   :  { %208 = vst.msk [vmem:[%s377_s2 + $0x48] sm:$0xff] %vm198_vm1, %v191_v60  ;;  %209 = vst.msk [vmem:[%s377_s2 + $0x50] sm:$0xff] %vm198_vm1, %v192_v61 }
 0x118   :  { %v156_v62 = vpop.permute.xlu1 %155  ;;  %v158_v63 = vpop.permute.xlu0 %157 }
 0x119   :  { %v193_v0 = vsel %vm181_vm0, %v112_v31, %v156_v62  ;;  %v194_v1 = vsel %vm181_vm0, %v113_v34, %v158_v63 }
 0x11a   :  { %210 = vst.msk [vmem:[%s377_s2 + $0x58] sm:$0xff] %vm198_vm1, %v193_v0  ;;  %211 = vst.msk [vmem:[%s377_s2 + $0x60] sm:$0xff] %vm198_vm1, %v194_v1 }
 0x11c   :  { %v160_v2 = vpop.permute.xlu1 %159  ;;  %v162_v3 = vpop.permute.xlu0 %161 }
 0x11d   :  { %v195_v4 = vsel %vm181_vm0, %v114_v35, %v160_v2  ;;  %v196_v5 = vsel %vm181_vm0, %v115_v38, %v162_v3 }
 0x11e   :  { %212 = vst.msk [vmem:[%s377_s2 + $0x68] sm:$0xff] %vm198_vm1, %v195_v4  ;;  %213 = vst.msk [vmem:[%s377_s2 + $0x70] sm:$0xff] %vm198_vm1, %v196_v5 }
 0x120   :  { %v164_v6 = vpop.permute.xlu1 %163 }
 0x121   :  { %v197_v7 = vsel %vm181_vm0, %v116_v39, %v164_v6 }
 0x122   :  { %214 = vst.msk [vmem:[%s377_s2 + $0x78] sm:$0xff] %vm198_vm1, %v197_v7 }
 0x123   :  { %219 = vsyncpa [#allocation3], 1 }

</bundles_post_ra>
